<compile_context>
chip_gen: v7x
topology: tpu7x:2x2x1
jax: 0.10.0
libtpu: 0.0.40
codegen_flags: <defaults>
</compile_context>

<pallas_src>
import math
from functools import partial

import jax
import jax.numpy as jnp
from jax.experimental import pallas as pl
from jax.experimental.pallas import tpu as pltpu

_LANES = 512  # lane width of every compute tile (multiple of 128)


def _round_up(n: int, m: int) -> int:
    return ((n + m - 1) // m) * m


def _sh_components(lmax, x, y, z):
    """Spherical-harmonic components for degrees 1..lmax (no l=0 term).

    Direct transcription of TensorInit._calculate_components; elementwise, so
    it is shared by the kernel body and the pure-JAX reference check.
    """
    sh_1_0, sh_1_1, sh_1_2 = x, y, z
    out = [sh_1_0, sh_1_1, sh_1_2]
    if lmax == 1:
        return out

    sh_2_0 = math.sqrt(3.0) * x * z
    sh_2_1 = math.sqrt(3.0) * x * y
    y2 = y * y
    x2z2 = x * x + z * z
    sh_2_2 = y2 - 0.5 * x2z2
    sh_2_3 = math.sqrt(3.0) * y * z
    sh_2_4 = math.sqrt(3.0) / 2.0 * (z * z - x * x)
    out += [sh_2_0, sh_2_1, sh_2_2, sh_2_3, sh_2_4]
    if lmax == 2:
        return out

    sh_3_0 = 1 / 6 * math.sqrt(42) * (sh_2_0 * z + sh_2_4 * x)
    sh_3_1 = math.sqrt(7) * sh_2_0 * y
    sh_3_2 = 1 / 8 * math.sqrt(168) * (4.0 * y2 - x2z2) * x
    sh_3_3 = 1 / 2 * math.sqrt(7) * y * (2.0 * y2 - 3.0 * x2z2)
    sh_3_4 = 1 / 8 * math.sqrt(168) * z * (4.0 * y2 - x2z2)
    sh_3_5 = math.sqrt(7) * sh_2_4 * y
    sh_3_6 = 1 / 6 * math.sqrt(42) * (sh_2_4 * z - sh_2_0 * x)
    out += [sh_3_0, sh_3_1, sh_3_2, sh_3_3, sh_3_4, sh_3_5, sh_3_6]
    if lmax == 3:
        return out

    sh_4_0 = 3 / 4 * math.sqrt(2) * (sh_3_0 * z + sh_3_6 * x)
    sh_4_1 = (3 / 4 * sh_3_0 * y
              + 3 / 8 * math.sqrt(6) * sh_3_1 * z
              + 3 / 8 * math.sqrt(6) * sh_3_5 * x)
    sh_4_2 = (-3 / 56 * math.sqrt(14) * sh_3_0 * z
              + 3 / 14 * math.sqrt(21) * sh_3_1 * y
              + 3 / 56 * math.sqrt(210) * sh_3_2 * z
              + 3 / 56 * math.sqrt(210) * sh_3_4 * x
              + 3 / 56 * math.sqrt(14) * sh_3_6 * x)
    sh_4_3 = (-3 / 56 * math.sqrt(42) * sh_3_1 * z
              + 3 / 28 * math.sqrt(105) * sh_3_2 * y
              + 3 / 28 * math.sqrt(70) * sh_3_3 * x
              + 3 / 56 * math.sqrt(42) * sh_3_5 * x)
    sh_4_4 = (-3 / 28 * math.sqrt(42) * sh_3_2 * x
              + 3 / 7 * math.sqrt(7) * sh_3_3 * y
              - 3 / 28 * math.sqrt(42) * sh_3_4 * z)
    sh_4_5 = (-3 / 56 * math.sqrt(42) * sh_3_1 * x
              + 3 / 28 * math.sqrt(70) * sh_3_3 * z
              + 3 / 28 * math.sqrt(105) * sh_3_4 * y
              - 3 / 56 * math.sqrt(42) * sh_3_5 * z)
    sh_4_6 = (-3 / 56 * math.sqrt(14) * sh_3_0 * x
              - 3 / 56 * math.sqrt(210) * sh_3_2 * x
              + 3 / 56 * math.sqrt(210) * sh_3_4 * z
              + 3 / 14 * math.sqrt(21) * sh_3_5 * y
              - 3 / 56 * math.sqrt(14) * sh_3_6 * z)
    sh_4_7 = (-3 / 8 * math.sqrt(6) * sh_3_1 * x
              + 3 / 8 * math.sqrt(6) * sh_3_5 * z
              + 3 / 4 * sh_3_6 * y)
    sh_4_8 = 3 / 4 * math.sqrt(2) * (-sh_3_0 * x + sh_3_6 * z)
    out += [sh_4_0, sh_4_1, sh_4_2, sh_4_3, sh_4_4, sh_4_5, sh_4_6, sh_4_7, sh_4_8]
    if lmax == 4:
        return out

    # TODO(synk): lmax >= 5 branches (degrees 5..8) of the original module are
    # not transcribed; the module default (l=2) and l=3,4 are covered.
    raise NotImplementedError("TensorInit Pallas kernel supports 1 <= l <= 4.")


def _make_tensor_init_kernel(lmax: int):
    def kernel(v_ref, o_ref):
        # v_ref: (3, BR, LANES)   o_ref: (n_comp, BR, LANES)  -- dense 2-D tiles
        x = v_ref[0].astype(jnp.float32)
        y = v_ref[1].astype(jnp.float32)
        z = v_ref[2].astype(jnp.float32)
        comps = _sh_components(lmax, x, y, z)
        for k, c in enumerate(comps):
            o_ref[k] = c.astype(o_ref.dtype)   # direct lane-dense slab stores
    return kernel


# Rough per-edge op counts / peak live f32 values (advisory only).
_FLOPS_PER_EDGE = {1: 0, 2: 16, 3: 60, 4: 140}
_LIVE_F32_VALS = {1: 4, 2: 12, 3: 22, 4: 32}


def _choose_block_rows(rows: int, target: int) -> int:
    """Rows of LANES-wide edges per grid step."""
    if rows <= target:
        if rows >= 16:
            # Split into >= 2 blocks so the "parallel" grid axis can shard
            # across both TensorCores on v7x instead of collapsing to grid=1.
            return min(target, _round_up((rows + 1) // 2, 8))
        return rows  # equals the full dim -> allowed by the (8,128) rule
    return target


@partial(jax.jit, static_argnames=("l", "lane_dense_output"))
def tensor_init(edge_vec: jax.Array, l: int = 2, lane_dense_output: bool = False):
    """Pallas TPU equivalent of TensorInit(l).forward(edge_vec).

    lane_dense_output=True returns the (n_comp, E) lane-dense layout and skips
    the final back-transpose (for consumers that can fuse it away).
    """
    if not (1 <= l <= 4):
        raise NotImplementedError("tensor_init supports 1 <= l <= 4 (default l=2).")
    assert edge_vec.shape[-1] == 3, "edge_vec must have last dim 3 (x, y, z)"

    n_comp = (l + 1) ** 2 - 1
    lead = edge_vec.shape[:-1]
    E = math.prod(lead) if lead else 1
    dtype = edge_vec.dtype
    esize = jnp.dtype(dtype).itemsize

    # ---- layout plumbing (single fused pad+transpose copy under jit) ----
    # (E, 3) -> (3, E_pad) -> (3, R, LANES): edges fill both sublanes and lanes.
    E_pad = _round_up(max(E, 1), _LANES)
    R = E_pad // _LANES
    vt = jnp.pad(edge_vec.reshape(E, 3).T, ((0, 0), (0, E_pad - E)))
    vt = vt.reshape(3, R, _LANES)

    target_rows = 256 if l <= 2 else 128      # ~128K / ~64K edges per grid step
    br = _choose_block_rows(R, target_rows)
    grid = (pl.cdiv(R, br),)
    te = br * _LANES                          # edges per grid step

    # Double-buffered in+out blocks + f32 intermediates, with headroom.
    io_bytes = 2 * (3 + n_comp) * esize * te
    inter_bytes = _LIVE_F32_VALS[l] * 4 * te
    vmem_limit = int(min(max(io_bytes + inter_bytes + (4 << 20), 16 << 20), 30 << 20))

    out = pl.pallas_call(
        _make_tensor_init_kernel(l),
        out_shape=jax.ShapeDtypeStruct((n_comp, R, _LANES), dtype),
        grid=grid,
        in_specs=[pl.BlockSpec((3, br, _LANES), lambda i: (0, i, 0))],
        out_specs=pl.BlockSpec((n_comp, br, _LANES), lambda i: (0, i, 0)),
        compiler_params=pltpu.CompilerParams(
            dimension_semantics=("parallel",),
            vmem_limit_bytes=vmem_limit,
        ),
        cost_estimate=pl.CostEstimate(
            flops=_FLOPS_PER_EDGE[l] * E_pad,
            transcendentals=0,
            bytes_accessed=(3 + n_comp) * esize * E_pad,
        ),
    )(vt)

    out = out.reshape(n_comp, E_pad)[:, :E]   # (n_comp, E), lane-dense
    if lane_dense_output:
        return out
    # TODO(synk): this back-transpose is a pure XLA relayout copy; downstream
    # GotenNet layers should consume lane_dense_output=True and fuse it away.
    return out.T.reshape(*lead, n_comp)


def _reference(edge_vec: jax.Array, l: int) -> jax.Array:
    comps = _sh_components(l, edge_vec[..., 0], edge_vec[..., 1], edge_vec[..., 2])
    return jnp.stack(comps, axis=-1).astype(edge_vec.dtype)


if __name__ == "__main__":
    key = jax.random.PRNGKey(0)

    # Deliberately not a multiple of the 512-lane tile (exercises pad + slice).
    num_edges = 200
    edge_vec = jax.random.normal(key, (num_edges, 3), dtype=jnp.float32)

    # Default degree (l=2), as in TensorInit().
    out = jax.block_until_ready(tensor_init(edge_vec, l=2))
    assert out.shape == (num_edges, 8) and out.dtype == edge_vec.dtype
    assert jnp.allclose(out, _reference(edge_vec, 2), atol=1e-5, rtol=1e-5)

    # Non-default degree.
    out3 = jax.block_until_ready(tensor_init(edge_vec, l=3))
    assert out3.shape == (num_edges, 15)
    assert jnp.allclose(out3, _reference(edge_vec, 3), atol=1e-5, rtol=1e-5)

    # Multi-block path (grid >= 2, masked partial last block) at max degree.
    edge_vec_big = jax.random.normal(jax.random.PRNGKey(1), (9000, 3), dtype=jnp.float32)
    out4 = jax.block_until_ready(tensor_init(edge_vec_big, l=4))
    assert out4.shape == (9000, 24)
    assert jnp.allclose(out4, _reference(edge_vec_big, 4), atol=1e-4, rtol=1e-5)

    # Lane-dense output option (no back-transpose) stays consistent.
    out_ld = jax.block_until_ready(tensor_init(edge_vec, l=2, lane_dense_output=True))
    assert out_ld.shape == (8, num_edges)
    assert jnp.allclose(out_ld, _reference(edge_vec, 2).T, atol=1e-5, rtol=1e-5)

    print("KERNEL_OK")
</pallas_src>

<mosaic_0001>
module attributes {stable_mosaic.version = 11 : i64} {
  func.func @kernel(%arg0: i32, %arg1: memref<3x1x512xf32, #tpu.memory_space<vmem>>, %arg2: memref<8x1x512xf32, #tpu.memory_space<vmem>>) attributes {dimension_semantics = [#tpu.dimension_semantics<parallel>], iteration_bounds = array<i64: 1>, scalar_prefetch = 0 : i64, scratch_operands = 0 : i64, tpu.core_type = #tpu.core_type<tc>, window_params = [{transform_indices = @transform_0, window_bounds = array<i64: 3, 1, 512>}, {transform_indices = @transform_1, window_bounds = array<i64: 8, 1, 512>}]} {
    %c0 = arith.constant 0 : index
    %c0_0 = arith.constant 0 : index
    %c0_1 = arith.constant 0 : index
    %0 = vector.load %arg1[%c0, %c0_0, %c0_1] : memref<3x1x512xf32, #tpu.memory_space<vmem>>, vector<1x1x512xf32>
    %1 = vector.shape_cast %0 : vector<1x1x512xf32> to vector<1x512xf32>
    %c1 = arith.constant 1 : index
    %c0_2 = arith.constant 0 : index
    %c0_3 = arith.constant 0 : index
    %2 = vector.load %arg1[%c1, %c0_2, %c0_3] : memref<3x1x512xf32, #tpu.memory_space<vmem>>, vector<1x1x512xf32>
    %3 = vector.shape_cast %2 : vector<1x1x512xf32> to vector<1x512xf32>
    %c2 = arith.constant 2 : index
    %c0_4 = arith.constant 0 : index
    %c0_5 = arith.constant 0 : index
    %4 = vector.load %arg1[%c2, %c0_4, %c0_5] : memref<3x1x512xf32, #tpu.memory_space<vmem>>, vector<1x1x512xf32>
    %5 = vector.shape_cast %4 : vector<1x1x512xf32> to vector<1x512xf32>
    %cst = arith.constant 1.73205078 : f32
    %6 = vector.broadcast %cst : f32 to vector<1x512xf32>
    %7 = arith.mulf %6, %1 : vector<1x512xf32>
    %8 = arith.mulf %7, %5 : vector<1x512xf32>
    %cst_6 = arith.constant 1.73205078 : f32
    %9 = vector.broadcast %cst_6 : f32 to vector<1x512xf32>
    %10 = arith.mulf %9, %1 : vector<1x512xf32>
    %11 = arith.mulf %10, %3 : vector<1x512xf32>
    %12 = arith.mulf %3, %3 : vector<1x512xf32>
    %13 = arith.mulf %1, %1 : vector<1x512xf32>
    %14 = arith.mulf %5, %5 : vector<1x512xf32>
    %15 = arith.addf %13, %14 : vector<1x512xf32>
    %cst_7 = arith.constant 5.000000e-01 : f32
    %16 = vector.broadcast %cst_7 : f32 to vector<1x512xf32>
    %17 = arith.mulf %16, %15 : vector<1x512xf32>
    %18 = arith.subf %12, %17 : vector<1x512xf32>
    %cst_8 = arith.constant 1.73205078 : f32
    %19 = vector.broadcast %cst_8 : f32 to vector<1x512xf32>
    %20 = arith.mulf %19, %3 : vector<1x512xf32>
    %21 = arith.mulf %20, %5 : vector<1x512xf32>
    %22 = arith.mulf %5, %5 : vector<1x512xf32>
    %23 = arith.mulf %1, %1 : vector<1x512xf32>
    %24 = arith.subf %22, %23 : vector<1x512xf32>
    %cst_9 = arith.constant 0.866025388 : f32
    %25 = vector.broadcast %cst_9 : f32 to vector<1x512xf32>
    %26 = arith.mulf %25, %24 : vector<1x512xf32>
    %c0_10 = arith.constant 0 : index
    %c0_11 = arith.constant 0 : index
    %c0_12 = arith.constant 0 : index
    %27 = vector.load %arg2[%c0_10, %c0_11, %c0_12] : memref<8x1x512xf32, #tpu.memory_space<vmem>>, vector<1x1x512xf32>
    %28 = vector.shape_cast %27 : vector<1x1x512xf32> to vector<1x512xf32>
    %29 = vector.shape_cast %1 : vector<1x512xf32> to vector<1x1x512xf32>
    tpu.vector_store %arg2[%c0_10, %c0_11, %c0_12], %29 {strides = array<i32>} : memref<8x1x512xf32, #tpu.memory_space<vmem>>, vector<1x1x512xf32>,
    %c1_13 = arith.constant 1 : index
    %c0_14 = arith.constant 0 : index
    %c0_15 = arith.constant 0 : index
    %30 = vector.load %arg2[%c1_13, %c0_14, %c0_15] : memref<8x1x512xf32, #tpu.memory_space<vmem>>, vector<1x1x512xf32>
    %31 = vector.shape_cast %30 : vector<1x1x512xf32> to vector<1x512xf32>
    %32 = vector.shape_cast %3 : vector<1x512xf32> to vector<1x1x512xf32>
    tpu.vector_store %arg2[%c1_13, %c0_14, %c0_15], %32 {strides = array<i32>} : memref<8x1x512xf32, #tpu.memory_space<vmem>>, vector<1x1x512xf32>,
    %c2_16 = arith.constant 2 : index
    %c0_17 = arith.constant 0 : index
    %c0_18 = arith.constant 0 : index
    %33 = vector.load %arg2[%c2_16, %c0_17, %c0_18] : memref<8x1x512xf32, #tpu.memory_space<vmem>>, vector<1x1x512xf32>
    %34 = vector.shape_cast %33 : vector<1x1x512xf32> to vector<1x512xf32>
    %35 = vector.shape_cast %5 : vector<1x512xf32> to vector<1x1x512xf32>
    tpu.vector_store %arg2[%c2_16, %c0_17, %c0_18], %35 {strides = array<i32>} : memref<8x1x512xf32, #tpu.memory_space<vmem>>, vector<1x1x512xf32>,
    %c3 = arith.constant 3 : index
    %c0_19 = arith.constant 0 : index
    %c0_20 = arith.constant 0 : index
    %36 = vector.load %arg2[%c3, %c0_19, %c0_20] : memref<8x1x512xf32, #tpu.memory_space<vmem>>, vector<1x1x512xf32>
    %37 = vector.shape_cast %36 : vector<1x1x512xf32> to vector<1x512xf32>
    %38 = vector.shape_cast %8 : vector<1x512xf32> to vector<1x1x512xf32>
    tpu.vector_store %arg2[%c3, %c0_19, %c0_20], %38 {strides = array<i32>} : memref<8x1x512xf32, #tpu.memory_space<vmem>>, vector<1x1x512xf32>,
    %c4 = arith.constant 4 : index
    %c0_21 = arith.constant 0 : index
    %c0_22 = arith.constant 0 : index
    %39 = vector.load %arg2[%c4, %c0_21, %c0_22] : memref<8x1x512xf32, #tpu.memory_space<vmem>>, vector<1x1x512xf32>
    %40 = vector.shape_cast %39 : vector<1x1x512xf32> to vector<1x512xf32>
    %41 = vector.shape_cast %11 : vector<1x512xf32> to vector<1x1x512xf32>
    tpu.vector_store %arg2[%c4, %c0_21, %c0_22], %41 {strides = array<i32>} : memref<8x1x512xf32, #tpu.memory_space<vmem>>, vector<1x1x512xf32>,
    %c5 = arith.constant 5 : index
    %c0_23 = arith.constant 0 : index
    %c0_24 = arith.constant 0 : index
    %42 = vector.load %arg2[%c5, %c0_23, %c0_24] : memref<8x1x512xf32, #tpu.memory_space<vmem>>, vector<1x1x512xf32>
    %43 = vector.shape_cast %42 : vector<1x1x512xf32> to vector<1x512xf32>
    %44 = vector.shape_cast %18 : vector<1x512xf32> to vector<1x1x512xf32>
    tpu.vector_store %arg2[%c5, %c0_23, %c0_24], %44 {strides = array<i32>} : memref<8x1x512xf32, #tpu.memory_space<vmem>>, vector<1x1x512xf32>,
    %c6 = arith.constant 6 : index
    %c0_25 = arith.constant 0 : index
    %c0_26 = arith.constant 0 : index
    %45 = vector.load %arg2[%c6, %c0_25, %c0_26] : memref<8x1x512xf32, #tpu.memory_space<vmem>>, vector<1x1x512xf32>
    %46 = vector.shape_cast %45 : vector<1x1x512xf32> to vector<1x512xf32>
    %47 = vector.shape_cast %21 : vector<1x512xf32> to vector<1x1x512xf32>
    tpu.vector_store %arg2[%c6, %c0_25, %c0_26], %47 {strides = array<i32>} : memref<8x1x512xf32, #tpu.memory_space<vmem>>, vector<1x1x512xf32>,
    %c7 = arith.constant 7 : index
    %c0_27 = arith.constant 0 : index
    %c0_28 = arith.constant 0 : index
    %48 = vector.load %arg2[%c7, %c0_27, %c0_28] : memref<8x1x512xf32, #tpu.memory_space<vmem>>, vector<1x1x512xf32>
    %49 = vector.shape_cast %48 : vector<1x1x512xf32> to vector<1x512xf32>
    %50 = vector.shape_cast %26 : vector<1x512xf32> to vector<1x1x512xf32>
    tpu.vector_store %arg2[%c7, %c0_27, %c0_28], %50 {strides = array<i32>} : memref<8x1x512xf32, #tpu.memory_space<vmem>>, vector<1x1x512xf32>,
    return
  }
  func.func @transform_0(%arg0: i32) -> (i32, i32, i32) {
    %c0_i32 = arith.constant 0 : i32
    %c0_i32_0 = arith.constant 0 : i32
    %c0_i32_1 = arith.constant 0 : i32
    return %c0_i32, %arg0, %c0_i32_0 : i32, i32, i32
  }
  func.func @transform_1(%arg0: i32) -> (i32, i32, i32) {
    %c0_i32 = arith.constant 0 : i32
    %c0_i32_0 = arith.constant 0 : i32
    %c0_i32_1 = arith.constant 0 : i32
    return %c0_i32, %arg0, %c0_i32_0 : i32, i32, i32
  }
}

</mosaic_0001>

<bundles_post_ra>
// kernel: tensor_init.1
= control target key start
LH: loop header
LB: loop body
LE: loop exit
PB: predicated region body
PF: predicated region fallthrough
CT: control target
= control target key end

     0   :  { %v26_v0 = vlaneseq  ;;  %s121_s0 = inlined_call_operand.vmem [shape: f32[3,1,512], index: 0, kind: input, shape index: {}]   ;;  %s122_s1 = inlined_call_operand.vmem [shape: f32[8,1,512], index: 1, kind: output, shape index: {}]  }
   0x1   :  { %v8_v1 = vld [vmem:[%s121_s0] sm:$0xf]  ;;  %v49_v2 = vld [vmem:[%s121_s0 + $0x4] sm:$0xf]  ;;  %v50_v3 = vld [vmem:[%s121_s0 + $0x8] sm:$0xf] }
   0x2   :  { %v13_v4 = vmul.f32 1.7320508, %v8_v1  ;;  %v17_v5 = vmul.f32 %v8_v1, %v8_v1  ;;  %vm77_vm0 = vcmp.lt.s32.totalorder %v26_v0, 512  ;;  %v18_v7 = vmul.f32 %v50_v3, %v50_v3 }
   0x3   :  { %30 = vst.msk [vmem:[%s122_s1] sm:$0xf] %vm77_vm0, %v8_v1  ;;  %51 = vst.msk [vmem:[%s122_s1 + $0x4] sm:$0xf] %vm77_vm0, %v49_v2  ;;  %v16_v8 = vmul.f32 %v49_v2, %v49_v2  ;;  %v22_v9 = vmul.f32 1.7320508, %v49_v2 }
   0x4   :  { %52 = vst.msk [vmem:[%s122_s1 + $0x8] sm:$0xf] %vm77_vm0, %v50_v3  ;;  %v14_v10 = vmul.f32 %v50_v3, %v13_v4  ;;  %v15_v11 = vmul.f32 %v49_v2, %v13_v4  ;;  %v19_v12 = vadd.f32 %v18_v7, %v17_v5  ;;  %v24_v13 = vsub.f32 %v18_v7, %v17_v5 }
   0x5   :  { %v23_v14 = vmul.f32 %v50_v3, %v22_v9 }
   0x6   :  { %53 = vst.msk [vmem:[%s122_s1 + $0xc] sm:$0xf] %vm77_vm0, %v14_v10  ;;  %54 = vst.msk [vmem:[%s122_s1 + $0x10] sm:$0xf] %vm77_vm0, %v15_v11  ;;  %v20_v15 = vmul.f32 0.5, %v19_v12 }
   0x7   :  { %v25_v16 = vmul.f32 0.8660254, %v24_v13  ;;  %56 = vst.msk [vmem:[%s122_s1 + $0x18] sm:$0xf] %vm77_vm0, %v23_v14 }
   0x8   :  { %v21_v17 = vsub.f32 %v16_v8, %v20_v15 }
   0x9   :  { %57 = vst.msk [vmem:[%s122_s1 + $0x1c] sm:$0xf] %vm77_vm0, %v25_v16 }
   0xa   :  { %55 = vst.msk [vmem:[%s122_s1 + $0x14] sm:$0xf] %vm77_vm0, %v21_v17 }

</bundles_post_ra>
